<compile_context>
chip_gen: v7x
topology: tpu7x:2x2x1
jax: 0.10.0
libtpu: 0.0.40
codegen_flags: <defaults>
</compile_context>

<pallas_src>
import math

import jax
import jax.numpy as jnp
from jax.experimental import pallas as pl
from jax.experimental.pallas import tpu as pltpu


def _leaky_relu(x, slope=0.4):
    return jnp.where(x > 0, x, slope * x)


def _round_up(x, m):
    return ((x + m - 1) // m) * m


def cond_upsampler_kernel(x_ref, w1_ref, b1_ref, w2_ref, b2_ref, o_ref):
    # First (block-diagonal) linear: [TM, pack*Lc] @ [pack*Lc, pack*H], f32 accum.
    h = jnp.dot(x_ref[...], w1_ref[...], preferred_element_type=jnp.float32)
    h = _leaky_relu(h + b1_ref[...])
    # Second (block-diagonal) linear; h kept in f32.
    o = jnp.dot(h, w2_ref[...], preferred_element_type=jnp.float32)
    o = _leaky_relu(o + b2_ref[...])
    o_ref[...] = o.astype(o_ref.dtype)


def cond_upsampler(x, w1, b1, w2, b2, *, block_rows=2048):
    """x: [..., cond_length] -> [..., cond_feat], matching the PyTorch module.

    block_rows: packed-row tile size (rounded to a multiple of 8).  Per-step VMEM at
    the default 2048 is 1 MiB (x) + 2 MiB (out) per buffer, ~6 MiB double-buffered
    plus ~0.2 MiB of resident block-diagonal weights — inside the default scoped VMEM
    on v5e/v6e/v7x.
    """
    orig_shape = x.shape
    cond_length = orig_shape[-1]
    hidden = w1.shape[1]
    cond_feat = w2.shape[1]

    n = 1
    for d in orig_shape[:-1]:
        n *= d
    x2d = x.reshape(n, cond_length)

    # Lane-packing factor: fold `pack` rows into the 128-lane axis.
    if cond_length < 128 and 128 % cond_length == 0:
        pack = 128 // cond_length
    else:
        pack = 1  # features already lane-dense (or not cleanly packable)

    n_eff = max(n, 1)
    n_pad = _round_up(n_eff, pack)
    rows_packed = n_pad // pack
    if rows_packed < 8:
        # Tiny input: pad packed rows up to a full (8, 128) tile so the single block
        # never exceeds the array extent.
        n_pad = _round_up(n_eff, pack * 8)
        rows_packed = n_pad // pack
    if n_pad != n:
        # Only triggers when n % pack != 0 or for tiny inputs; at most pack*8-1 rows.
        x2d = jnp.pad(x2d, ((0, n_pad - n), (0, 0)))

    in_p = pack * cond_length
    hid_p = pack * hidden
    out_p = pack * cond_feat

    # Contiguous (free) reshape: row i of x_packed holds original rows
    # i*pack .. i*pack+pack-1 side by side along the lane axis.
    x_packed = x2d.reshape(rows_packed, in_p)

    # Block-diagonal replicated weights / tiled biases (built once, tiny).
    w1_p = jnp.kron(jnp.eye(pack, dtype=w1.dtype), w1)          # (in_p, hid_p)
    w2_p = jnp.kron(jnp.eye(pack, dtype=w2.dtype), w2)          # (hid_p, out_p)
    b1_p = jnp.tile(b1, pack).reshape(1, hid_p)
    b2_p = jnp.tile(b2, pack).reshape(1, out_p)

    # Packed-row tile: multiple of 8, <= rows_packed, and <= ~half of rows_packed so
    # the grid has >=2 steps (v7x megacore) whenever there is enough work.
    block_rows = max(8, _round_up(block_rows, 8))
    tm = min(block_rows, max(8, _round_up(pl.cdiv(rows_packed, 2), 8)))
    grid = (pl.cdiv(rows_packed, tm),)  # last block may be partial (masked)

    out_packed = pl.pallas_call(
        cond_upsampler_kernel,
        out_shape=jax.ShapeDtypeStruct((rows_packed, out_p), x.dtype),
        grid=grid,
        in_specs=[
            # Row-tiled, lane-dense activations: new block each grid step (pipelined).
            pl.BlockSpec((tm, in_p), lambda i: (i, 0)),
            # Weights / biases: constant block -> fetched once, VMEM-resident.
            pl.BlockSpec((in_p, hid_p), lambda i: (0, 0)),
            pl.BlockSpec((1, hid_p), lambda i: (0, 0)),
            pl.BlockSpec((hid_p, out_p), lambda i: (0, 0)),
            pl.BlockSpec((1, out_p), lambda i: (0, 0)),
        ],
        out_specs=pl.BlockSpec((tm, out_p), lambda i: (i, 0)),
        compiler_params=pltpu.CompilerParams(
            # Rows are embarrassingly parallel -> megacore sharding on v7x.
            dimension_semantics=("parallel",)),
    )(x_packed, w1_p, b1_p, w2_p, b2_p)

    out = out_packed.reshape(n_pad, cond_feat)[:n]
    return out.reshape(*orig_shape[:-1], cond_feat)


def init_params(key, cond_length, cond_feat, dtype=jnp.float32):
    """Deterministic init matching nn.Linear's U(-1/sqrt(fan_in), 1/sqrt(fan_in))."""
    hidden = cond_feat // 2
    k1, k2, k3, k4 = jax.random.split(key, 4)
    bound1 = 1.0 / math.sqrt(cond_length)
    bound2 = 1.0 / math.sqrt(hidden)
    # Stored as (in, out) == transpose of PyTorch's (out, in).
    w1 = jax.random.uniform(k1, (cond_length, hidden), dtype, -bound1, bound1)
    b1 = jax.random.uniform(k2, (hidden,), dtype, -bound1, bound1)
    w2 = jax.random.uniform(k3, (hidden, cond_feat), dtype, -bound2, bound2)
    b2 = jax.random.uniform(k4, (cond_feat,), dtype, -bound2, bound2)
    return w1, b1, w2, b2


def reference(x, w1, b1, w2, b2):
    h = jax.nn.leaky_relu(x @ w1 + b1, negative_slope=0.4)
    return jax.nn.leaky_relu(h @ w2 + b2, negative_slope=0.4)


if __name__ == "__main__":
    cond_length = 16   # linear1 input features
    cond_feat = 32     # linear2 output features (hidden = 16)
    batch, seq = 2, 8

    key = jax.random.PRNGKey(0)
    kx, kp = jax.random.split(key)
    x = jax.random.normal(kx, (batch, seq, cond_length), jnp.float32)
    w1, b1, w2, b2 = init_params(kp, cond_length, cond_feat)

    # Small case: tiny-input padding path, single full (8,128) packed block.
    out = cond_upsampler(x, w1, b1, w2, b2)
    jax.block_until_ready(out)
    ref = reference(x, w1, b1, w2, b2)
    assert out.shape == (batch, seq, cond_feat)
    assert jnp.allclose(out, ref, atol=1e-5, rtol=1e-5)

    # Ragged case: n % pack != 0 (alignment pad) + partial trailing block (masked).
    x_big = jax.random.normal(kx, (5, 413, cond_length), jnp.float32)
    out_big = cond_upsampler(x_big, w1, b1, w2, b2, block_rows=512)
    jax.block_until_ready(out_big)
    ref_big = reference(x_big, w1, b1, w2, b2)
    assert out_big.shape == (5, 413, cond_feat)
    assert jnp.allclose(out_big, ref_big, atol=1e-5, rtol=1e-5)

    # Aligned multi-step case: no pad, 2 full pipelined grid steps.
    x_mid = jax.random.normal(kp, (4, 1024, cond_length), jnp.float32)
    out_mid = cond_upsampler(x_mid, w1, b1, w2, b2)
    jax.block_until_ready(out_mid)
    ref_mid = reference(x_mid, w1, b1, w2, b2)
    assert out_mid.shape == (4, 1024, cond_feat)
    assert jnp.allclose(out_mid, ref_mid, atol=1e-5, rtol=1e-5)

    print("KERNEL_OK")
</pallas_src>

<mosaic_0001>
module attributes {stable_mosaic.version = 11 : i64} {
  func.func @cond_upsampler_kernel(%arg0: i32, %arg1: memref<8x128xf32, #tpu.memory_space<vmem>>, %arg2: memref<128x128xf32, #tpu.memory_space<vmem>>, %arg3: memref<1x128xf32, #tpu.memory_space<vmem>>, %arg4: memref<128x256xf32, #tpu.memory_space<vmem>>, %arg5: memref<1x256xf32, #tpu.memory_space<vmem>>, %arg6: memref<8x256xf32, #tpu.memory_space<vmem>>) attributes {dimension_semantics = [#tpu.dimension_semantics<parallel>], iteration_bounds = array<i64: 1>, scalar_prefetch = 0 : i64, scratch_operands = 0 : i64, tpu.core_type = #tpu.core_type<tc>, window_params = [{transform_indices = @transform_0, window_bounds = array<i64: 8, 128>}, {pipeline_mode = #tpu.pipeline_mode<synchronous>, transform_indices = @transform_1, window_bounds = array<i64: 128, 128>}, {pipeline_mode = #tpu.pipeline_mode<synchronous>, transform_indices = @transform_2, window_bounds = array<i64: 1, 128>}, {pipeline_mode = #tpu.pipeline_mode<synchronous>, transform_indices = @transform_3, window_bounds = array<i64: 128, 256>}, {pipeline_mode = #tpu.pipeline_mode<synchronous>, transform_indices = @transform_4, window_bounds = array<i64: 1, 256>}, {transform_indices = @transform_5, window_bounds = array<i64: 8, 256>}]} {
    %c0 = arith.constant 0 : index
    %c0_0 = arith.constant 0 : index
    %0 = vector.load %arg1[%c0, %c0_0] : memref<8x128xf32, #tpu.memory_space<vmem>>, vector<8x128xf32>
    %c0_1 = arith.constant 0 : index
    %c0_2 = arith.constant 0 : index
    %1 = vector.load %arg2[%c0_1, %c0_2] : memref<128x128xf32, #tpu.memory_space<vmem>>, vector<128x128xf32>
    %cst = arith.constant dense<0.000000e+00> : vector<8x128xf32>
    %2 = tpu.matmul %0, %1, %cst {dimension_numbers = #tpu.dot_dimension_numbers<[1], [0], [0], [1], [0, 0, 1, 1], [], []>} : vector<8x128xf32>, vector<128x128xf32>, vector<8x128xf32> -> vector<8x128xf32>
    %c0_3 = arith.constant 0 : index
    %c0_4 = arith.constant 0 : index
    %3 = vector.load %arg3[%c0_3, %c0_4] : memref<1x128xf32, #tpu.memory_space<vmem>>, vector<1x128xf32>
    %4 = vector.broadcast %3 : vector<1x128xf32> to vector<8x128xf32>
    %5 = arith.addf %2, %4 : vector<8x128xf32>
    %cst_5 = arith.constant 0.000000e+00 : f32
    %6 = vector.broadcast %cst_5 : f32 to vector<8x128xf32>
    %7 = arith.cmpf ogt, %5, %6 : vector<8x128xf32>
    %cst_6 = arith.constant 4.000000e-01 : f32
    %8 = vector.broadcast %cst_6 : f32 to vector<8x128xf32>
    %9 = arith.mulf %8, %5 : vector<8x128xf32>
    %10 = arith.select %7, %5, %9 : vector<8x128xi1>, vector<8x128xf32>
    %c0_7 = arith.constant 0 : index
    %c0_8 = arith.constant 0 : index
    %11 = vector.load %arg4[%c0_7, %c0_8] : memref<128x256xf32, #tpu.memory_space<vmem>>, vector<128x256xf32>
    %cst_9 = arith.constant dense<0.000000e+00> : vector<8x256xf32>
    %12 = tpu.matmul %10, %11, %cst_9 {dimension_numbers = #tpu.dot_dimension_numbers<[1], [0], [0], [1], [0, 0, 1, 1], [], []>} : vector<8x128xf32>, vector<128x256xf32>, vector<8x256xf32> -> vector<8x256xf32>
    %c0_10 = arith.constant 0 : index
    %c0_11 = arith.constant 0 : index
    %13 = vector.load %arg5[%c0_10, %c0_11] : memref<1x256xf32, #tpu.memory_space<vmem>>, vector<1x256xf32>
    %14 = vector.broadcast %13 : vector<1x256xf32> to vector<8x256xf32>
    %15 = arith.addf %12, %14 : vector<8x256xf32>
    %cst_12 = arith.constant 0.000000e+00 : f32
    %16 = vector.broadcast %cst_12 : f32 to vector<8x256xf32>
    %17 = arith.cmpf ogt, %15, %16 : vector<8x256xf32>
    %cst_13 = arith.constant 4.000000e-01 : f32
    %18 = vector.broadcast %cst_13 : f32 to vector<8x256xf32>
    %19 = arith.mulf %18, %15 : vector<8x256xf32>
    %20 = arith.select %17, %15, %19 : vector<8x256xi1>, vector<8x256xf32>
    %c0_14 = arith.constant 0 : index
    %c0_15 = arith.constant 0 : index
    %21 = vector.load %arg6[%c0_14, %c0_15] : memref<8x256xf32, #tpu.memory_space<vmem>>, vector<8x256xf32>
    tpu.vector_store %arg6[%c0_14, %c0_15], %20 {strides = array<i32>} : memref<8x256xf32, #tpu.memory_space<vmem>>, vector<8x256xf32>,
    return
  }
  func.func @transform_0(%arg0: i32) -> (i32, i32) {
    %c0_i32 = arith.constant 0 : i32
    %c0_i32_0 = arith.constant 0 : i32
    return %arg0, %c0_i32 : i32, i32
  }
  func.func @transform_1(%arg0: i32) -> (i32, i32) {
    %c0_i32 = arith.constant 0 : i32
    %c0_i32_0 = arith.constant 0 : i32
    %c0_i32_1 = arith.constant 0 : i32
    return %c0_i32, %c0_i32_0 : i32, i32
  }
  func.func @transform_2(%arg0: i32) -> (i32, i32) {
    %c0_i32 = arith.constant 0 : i32
    %c0_i32_0 = arith.constant 0 : i32
    %c0_i32_1 = arith.constant 0 : i32
    return %c0_i32, %c0_i32_0 : i32, i32
  }
  func.func @transform_3(%arg0: i32) -> (i32, i32) {
    %c0_i32 = arith.constant 0 : i32
    %c0_i32_0 = arith.constant 0 : i32
    %c0_i32_1 = arith.constant 0 : i32
    return %c0_i32, %c0_i32_0 : i32, i32
  }
  func.func @transform_4(%arg0: i32) -> (i32, i32) {
    %c0_i32 = arith.constant 0 : i32
    %c0_i32_0 = arith.constant 0 : i32
    %c0_i32_1 = arith.constant 0 : i32
    return %c0_i32, %c0_i32_0 : i32, i32
  }
  func.func @transform_5(%arg0: i32) -> (i32, i32) {
    %c0_i32 = arith.constant 0 : i32
    %c0_i32_0 = arith.constant 0 : i32
    return %arg0, %c0_i32 : i32, i32
  }
}

</mosaic_0001>

<bundles_post_ra>
// kernel: tpu_custom_call.1
= control target key start
LH: loop header
LB: loop body
LE: loop exit
PB: predicated region body
PF: predicated region fallthrough
CT: control target
= control target key end

     0   :  { %10 = vsyncpa [#allocation3], 0  ;;  %s613_s0 = inlined_call_operand.hbm [shape: f32[8,128], index: 0, kind: input, shape index: {}]   ;;  %s614_s1 = inlined_call_operand.hbm [shape: f32[128,128], index: 1, kind: input, shape index: {}]   ;;  %s615_s2 = inlined_call_operand.vmem [shape: f32[1,128], index: 2, kind: input, shape index: {}]   ;;  %s616_s3 = inlined_call_operand.hbm [shape: f32[128,256], index: 3, kind: input, shape index: {}]   ;;  %s617_s4 = inlined_call_operand.vmem [shape: f32[1,256], index: 4, kind: input, shape index: {}]   ;;  %s618_s5 = inlined_call_operand.hbm [shape: f32[8,256], index: 5, kind: output, shape index: {}]  }
   0x1   :  { %11 = vsyncpa [#allocation6], 0 }
   0x2   :  { %12 = vsyncpa [#allocation4], 0  ;;  %s510_s18 = smov [#allocation5]   ;;  %s416_s22 = scalar_lea.hbm %s614_s1, 2048 }
   0x3   :  { %s28_s19 = sshll.u32 %s510_s18, 4  ;;  %p417_p0 = scmp.ne.s32.totalorder %s614_s1, %s416_s22  ;;  %s29_s19 = int_to_ptr.vmem [resolvable:$true] %s28_s19 }
   0x4   :  { %p420_p1 = scmp.lt.u32.totalorder %s416_s22, %s614_s1 }
   0x6   :  { %p422_p2 = pnand %p420_p1, %p417_p0 }
   0x8   :  { %425 = shalt.err (!%p422_p2)
}
   0x9   :  { %s426_s27 = scalar_lea.vmem %s29_s19, 2048  ;;  %p431_p4 = scmp.lt.s32.totalorder %s29_s19, %s29_s19 }
   0xa   :  { %p427_p3 = scmp.ne.s32.totalorder %s29_s19, %s426_s27  ;;  %p432_p5 = scmp.lt.s32.totalorder %s426_s27, %s426_s27 }
   0xc   :  { %p433_p6 = por %p432_p5, %p431_p4 }
   0xe   :  { %p434_p7 = pnand %p433_p6, %p427_p3 }
  0x10   :  { %437 = shalt.err (!%p434_p7)
}
  0x11   :  { %s511_s28 = smov 128   ;;  %s512_s29 = smov 8  }
  0x12   :  { %34 = dma.hbm_to_vmem [thread:$0]  %s614_s1, 2048, %s29_s19, [#allocation6], %s511_s28, %s511_s28, %s512_s29  }
  0x13   :  { %s513_s7 = smov [#allocation2]   ;;  %s514_s9 = smov [#allocation7]  }
  0x14   :  { %s19_s8 = sshll.u32 %s513_s7, 4  ;;  %s42_s10 = sshll.u32 %s514_s9, 4  ;;  %s20_s8 = int_to_ptr.vmem [resolvable:$true] %s19_s8  ;;  %s43_s10 = int_to_ptr.vmem [resolvable:$true] %s42_s10 }
  0x15   :  { %s438_s13 = scalar_lea.hbm %s613_s0, 128 }
  0x16   :  { %p439_p8 = scmp.ne.s32.totalorder %s613_s0, %s438_s13  ;;  %p442_p9 = scmp.lt.u32.totalorder %s438_s13, %s613_s0 }
  0x18   :  { %p444_p10 = pnand %p442_p9, %p439_p8 }
  0x1a   :  { %447 = shalt.err (!%p444_p10)
}
  0x1b   :  { %s448_s1 = scalar_lea.vmem %s20_s8, 128  ;;  %p453_p12 = scmp.lt.s32.totalorder %s20_s8, %s20_s8 }
  0x1c   :  { %p449_p11 = scmp.ne.s32.totalorder %s20_s8, %s448_s1  ;;  %p454_p13 = scmp.lt.s32.totalorder %s448_s1, %s448_s1 }
  0x1e   :  { %p455_p0 = por %p454_p13, %p453_p12 }
  0x20   :  { %p456_p1 = pnand %p455_p0, %p449_p11 }
  0x22   :  { %459 = shalt.err (!%p456_p1)
}
  0x23   :  { %22 = dma.hbm_to_vmem [thread:$0]  %s613_s0, 128, %s20_s8, [#allocation3]  }
  0x24   :  { %s460_s22 = scalar_lea.hbm %s616_s3, 4096 }
  0x25   :  { %p461_p2 = scmp.ne.s32.totalorder %s616_s3, %s460_s22  ;;  %p464_p3 = scmp.lt.u32.totalorder %s460_s22, %s616_s3 }
  0x27   :  { %p466_p4 = pnand %p464_p3, %p461_p2 }
  0x29   :  { %469 = shalt.err (!%p466_p4)
}
  0x2a   :  { %s470_s27 = scalar_lea.vmem %s43_s10, 4096  ;;  %p475_p6 = scmp.lt.s32.totalorder %s43_s10, %s43_s10 }
  0x2b   :  { %p471_p5 = scmp.ne.s32.totalorder %s43_s10, %s470_s27  ;;  %p476_p7 = scmp.lt.s32.totalorder %s470_s27, %s470_s27 }
  0x2d   :  { %p477_p8 = por %p476_p7, %p475_p6 }
  0x2f   :  { %p478_p9 = pnand %p477_p8, %p471_p5 }
  0x31   :  { %481 = shalt.err (!%p478_p9)
}
  0x32   :  { %s515_s0 = smov 256   ;;  %s516_s28 = smov 16  }
  0x33   :  { %48 = dma.hbm_to_vmem [thread:$0]  %s616_s3, 4096, %s43_s10, [#allocation6], %s515_s0, %s515_s0, %s516_s28  }
  0x34   :  { %504 = dma.done.wait [#allocation3], 128  }
  0x35   :  { %505 = vsyncadd [#allocation3], 4294967168 }
  0x36   :  { %506 = dma.done.wait [#allocation6], 6144  }
  0x37   :  { %507 = vsyncadd [#allocation6], 4294961152  ;;  %v517_v0 = vmov 0.0|0.0   ;;  %vm518_vm0 = vmmov 0   ;;  %v519_v1 = vmov 0.0   ;;  %v61_v2 = vld [vmem:[#allocation5] sm:$0xff] }
  0x38   :  { %349 = vmatprep.subr.bf16.mxu0 %v517_v0  ;;  %346 = vmatprep.mubr.msk.f32.mxu0 %vm518_vm0, %v519_v1  ;;  %v62_v3 = vld [vmem:[#allocation5 + $0x8] sm:$0xff]  ;;  %v63_v4 = vld [vmem:[#allocation5 + $0x10] sm:$0xff]  ;;  %v64_v6 = vld [vmem:[#allocation5 + $0x18] sm:$0xff] }
  0x39   :  { %265 = vmatprep.mubr.f32.mxu1 %v519_v1  ;;  %v350_v5 = vpack.c.bf16 %v62_v3, %v61_v2  ;;  %v353_v7 = vpack.c.bf16 %v64_v6, %v63_v4  ;;  %v65_v8 = vld [vmem:[#allocation5 + $0x20] sm:$0xff]  ;;  %v66_v9 = vld [vmem:[#allocation5 + $0x28] sm:$0xff]  ;;  %v67_v11 = vld [vmem:[#allocation5 + $0x30] sm:$0xff] }
  0x3a   :  { %v158_v10 = vld [vmem:[#allocation7 + $0x8] sm:$0xff]  ;;  %v68_v12 = vld [vmem:[#allocation5 + $0x38] sm:$0xff]  ;;  %v157_v14 = vld [vmem:[#allocation7] sm:$0xff]  ;;  %v356_v16 = vpack.c.bf16 %v66_v9, %v65_v8 }
  0x3b   :  { %351 = vmatpush3.bf16.msra.mxu0 %v350_v5  ;;  %v160_v13 = vld [vmem:[#allocation7 + $0x18] sm:$0xff]  ;;  %v159_v15 = vld [vmem:[#allocation7 + $0x10] sm:$0xff]  ;;  %v162_v19 = vld [vmem:[#allocation7 + $0x28] sm:$0xff]  ;;  %v359_v27 = vpack.c.bf16 %v68_v12, %v67_v11 }
  0x3c   :  { %352 = vmatprep.subr.bf16.mxu0 %v517_v0  ;;  %v373_v17 = vpack.c.bf16 %v160_v13, %v158_v10  ;;  %v375_v18 = vpack.c.bf16 %v159_v15, %v157_v14  ;;  %v164_v20 = vld [vmem:[#allocation7 + $0x38] sm:$0xff]  ;;  %v161_v21 = vld [vmem:[#allocation7 + $0x20] sm:$0xff]  ;;  %v163_v23 = vld [vmem:[#allocation7 + $0x30] sm:$0xff] }
  0x3d   :  { %v377_v22 = vpack.c.bf16 %v164_v20, %v162_v19  ;;  %v166_v24 = vld [vmem:[#allocation7 + $0x48] sm:$0xff]  ;;  %v168_v25 = vld [vmem:[#allocation7 + $0x58] sm:$0xff]  ;;  %v379_v26 = vpack.c.bf16 %v163_v23, %v161_v21  ;;  %v69_v28 = vld [vmem:[#allocation5 + $0x40] sm:$0xff] }
  0x3e   :  { %374 = vmatprep.subr.bf16.mxu1 %v373_v17  ;;  %v381_v29 = vpack.c.bf16 %v168_v25, %v166_v24  ;;  %v165_v30 = vld [vmem:[#allocation7 + $0x40] sm:$0xff]  ;;  %v167_v31 = vld [vmem:[#allocation7 + $0x50] sm:$0xff]  ;;  %v70_v32 = vld [vmem:[#allocation5 + $0x48] sm:$0xff]  ;;  %v191_v17 = vlaneseq }
  0x3f   :  { %354 = vmatpush3.bf16.msra.mxu0 %v353_v7  ;;  %376 = vmatpush1.bf16.msra.mxu1 %v375_v18  ;;  %v170_v33 = vld [vmem:[#allocation7 + $0x68] sm:$0xff]  ;;  %v172_v34 = vld [vmem:[#allocation7 + $0x78] sm:$0xff]  ;;  %v383_v35 = vpack.c.bf16 %v167_v31, %v165_v30  ;;  %v362_v36 = vpack.c.bf16 %v70_v32, %v69_v28  ;;  %v71_v37 = vld [vmem:[#allocation5 + $0x50] sm:$0xff] }
  0x40   :  { %355 = vmatprep.subr.bf16.mxu0 %v517_v0  ;;  %378 = vmatprep.subr.bf16.mxu1 %v377_v22  ;;  %v385_v38 = vpack.c.bf16 %v172_v34, %v170_v33  ;;  %v169_v39 = vld [vmem:[#allocation7 + $0x60] sm:$0xff]  ;;  %v171_v40 = vld [vmem:[#allocation7 + $0x70] sm:$0xff]  ;;  %v72_v41 = vld [vmem:[#allocation5 + $0x58] sm:$0xff]  ;;  %v192_v18 = vshrl.u32 %v191_v17, 7 }
  0x41   :  { %v174_v42 = vld [vmem:[#allocation7 + $0x88] sm:$0xff]  ;;  %v176_v43 = vld [vmem:[#allocation7 + $0x98] sm:$0xff]  ;;  %v387_v44 = vpack.c.bf16 %v171_v40, %v169_v39  ;;  %v365_v45 = vpack.c.bf16 %v72_v41, %v71_v37  ;;  %v73_v46 = vld [vmem:[#allocation5 + $0x60] sm:$0xff] }
  0x42   :  { %v389_v47 = vpack.c.bf16 %v176_v43, %v174_v42  ;;  %v173_v48 = vld [vmem:[#allocation7 + $0x80] sm:$0xff]  ;;  %v175_v49 = vld [vmem:[#allocation7 + $0x90] sm:$0xff]  ;;  %v74_v50 = vld [vmem:[#allocation5 + $0x68] sm:$0xff]  ;;  %v193_v19 = vsub.s32 0, %v192_v18  ;;  %v197_v21 = vsub.s32 1, %v192_v18 }
  0x43   :  { %357 = vmatpush3.bf16.msra.mxu0 %v356_v16  ;;  %380 = vmatpush1.bf16.msra.mxu1 %v379_v26  ;;  %v178_v51 = vld [vmem:[#allocation7 + $0xa8] sm:$0xff]  ;;  %v180_v52 = vld [vmem:[#allocation7 + $0xb8] sm:$0xff]  ;;  %v391_v53 = vpack.c.bf16 %v175_v49, %v173_v48  ;;  %v368_v54 = vpack.c.bf16 %v74_v50, %v73_v46  ;;  %v75_v55 = vld [vmem:[#allocation5 + $0x70] sm:$0xff] }
  0x44   :  { %358 = vmatprep.subr.bf16.mxu0 %v517_v0  ;;  %382 = vmatprep.subr.bf16.mxu1 %v381_v29  ;;  %v393_v56 = vpack.c.bf16 %v180_v52, %v178_v51  ;;  %v177_v57 = vld [vmem:[#allocation7 + $0xa0] sm:$0xff]  ;;  %v179_v58 = vld [vmem:[#allocation7 + $0xb0] sm:$0xff]  ;;  %v76_v59 = vld [vmem:[#allocation5 + $0x78] sm:$0xff] }
  0x45   :  { %v182_v60 = vld [vmem:[#allocation7 + $0xc8] sm:$0xff]  ;;  %v184_v61 = vld [vmem:[#allocation7 + $0xd8] sm:$0xff]  ;;  %v395_v62 = vpack.c.bf16 %v179_v58, %v177_v57  ;;  %v371_v63 = vpack.c.bf16 %v76_v59, %v75_v55  ;;  %v181_v2 = vld [vmem:[#allocation7 + $0xc0] sm:$0xff] }
  0x46   :  { %v397_v1 = vpack.c.bf16 %v184_v61, %v182_v60  ;;  %v183_v3 = vld [vmem:[#allocation7 + $0xd0] sm:$0xff]  ;;  %v60_v5 = vld [vmem:[#allocation2] sm:$0xff]  ;;  %v186_v6 = vld [vmem:[#allocation7 + $0xe8] sm:$0xff] }
  0x47   :  { %360 = vmatpush3.bf16.msra.mxu0 %v359_v27  ;;  %384 = vmatpush1.bf16.msra.mxu1 %v383_v35  ;;  %v399_v4 = vpack.c.bf16 %v183_v3, %v181_v2  ;;  %v188_v7 = vld [vmem:[#allocation7 + $0xf8] sm:$0xff]  ;;  %v185_v9 = vld [vmem:[#allocation7 + $0xe0] sm:$0xff]  ;;  %v187_v10 = vld [vmem:[#allocation7 + $0xf0] sm:$0xff] }
  0x48   :  { %361 = vmatprep.subr.bf16.mxu0 %v517_v0  ;;  %386 = vmatprep.subr.bf16.mxu1 %v385_v38  ;;  %v401_v8 = vpack.c.bf16 %v188_v7, %v186_v6  ;;  %v403_v11 = vpack.c.bf16 %v187_v10, %v185_v9  ;;  %v296_v12 = vld [vmem:[%s615_s2] ss:$0 sm:$0xff]  ;;  %s520_s2 = smov [#allocation8]  }
  0x49   :  { %v189_v20 = vld [vmem:[%s617_s4] sm:$0x3]  ;;  %s286_s9 = sshll.u32 %s520_s2, 4  ;;  %s287_s9 = int_to_ptr.vmem [resolvable:$true] %s286_s9 }
  0x4a   :  { %v194_v22 = vrot.slane %v189_v20, %v193_v19  ;;  %v198_v23 = vrot.slane %v189_v20, %v197_v21  ;;  %s482_s10 = scalar_lea.vmem %s287_s9, 256  ;;  %p487_p11 = scmp.lt.s32.totalorder %s287_s9, %s287_s9 }
  0x4b   :  { %363 = vmatpush3.bf16.msra.mxu0 %v362_v36  ;;  %388 = vmatpush1.bf16.msra.mxu1 %v387_v44  ;;  %p483_p10 = scmp.ne.s32.totalorder %s287_s9, %s482_s10  ;;  %p488_p12 = scmp.lt.s32.totalorder %s482_s10, %s482_s10 }
  0x4c   :  { %364 = vmatprep.subr.bf16.mxu0 %v517_v0  ;;  %390 = vmatprep.subr.bf16.mxu1 %v389_v47 }
  0x4d   :  { %p489_p13 = por %p488_p12, %p487_p11 }
  0x4f   :  { %366 = vmatpush3.bf16.msra.mxu0 %v365_v45  ;;  %392 = vmatpush1.bf16.msra.mxu1 %v391_v53  ;;  %p490_p0 = pnand %p489_p13, %p483_p10 }
  0x50   :  { %367 = vmatprep.subr.bf16.mxu0 %v517_v0  ;;  %394 = vmatprep.subr.bf16.mxu1 %v393_v56 }
  0x53   :  { %369 = vmatpush3.bf16.msra.mxu0 %v368_v54  ;;  %396 = vmatpush1.bf16.msra.mxu1 %v395_v62 }
  0x54   :  { %370 = vmatprep.subr.bf16.mxu0 %v517_v0  ;;  %398 = vmatprep.subr.bf16.mxu1 %v397_v1 }
  0x57   :  { %372 = vmatpush3.bf16.msra.mxu0 %v371_v63  ;;  %400 = vmatpush1.bf16.msra.mxu1 %v399_v4 }
  0x58   :  { %402 = vmatprep.subr.bf16.mxu1 %v401_v8 }
  0x5a   :  { %347 = vmatmul.mubr.f32.vlgmr.msra.gmra.mrb[0].mxu0 %v60_v5 }
  0x5b   :  { %404 = vmatpush1.bf16.msra.mxu1 %v403_v11 }
 0x12d   :  { %v150_v0 = vpop.f32.mrb[0].mxu0 }
 0x12e   :  { %v151_v13 = vadd.f32 %v296_v12, %v150_v0  ;;  %v348_v14 = vpop.f32.mrb[1].mxu0 }
 0x130   :  { %v155_v15 = vmul.f32 0.4, %v151_v13  ;;  %vm154_vm1 = vcmp.gt.f32.partialorder %v151_v13, 0.0 }
 0x132   :  { %v156_v16 = vsel %vm154_vm1, %v151_v13, %v155_v15 }
 0x133   :  { %266 = vmatmul.mubr.f32.vlgmr.msra.gmra.mrb[0].mxu1 %v156_v16 }
 0x206   :  { %v267_v24 = vpop.f32.mrb[0].mxu1 }
 0x207   :  { %v268_v25 = vadd.f32 %v267_v24, %v194_v22  ;;  %v269_v26 = vpop.f32.mrb[1].mxu1 }
 0x208   :  { %v270_v27 = vadd.f32 %v269_v26, %v198_v23 }
 0x209   :  { %vm272_vm2 = vcmp.gt.f32.partialorder %v268_v25, 0.0  ;;  %v274_v28 = vmul.f32 0.4, %v268_v25 }
 0x20a   :  { %vm273_vm3 = vcmp.gt.f32.partialorder %v270_v27, 0.0  ;;  %v275_v29 = vmul.f32 0.4, %v270_v27 }
 0x20b   :  { %v276_v30 = vsel %vm272_vm2, %v268_v25, %v274_v28 }
 0x20c   :  { %v277_v31 = vsel %vm273_vm3, %v270_v27, %v275_v29  ;;  %278 = vst [vmem:[#allocation8] sm:$0xff] %v276_v30 }
 0x20d   :  { %279 = vst [vmem:[#allocation8 + $0x8] sm:$0xff] %v277_v31 }
 0x20e   :  { %493 = shalt.err (!%p490_p0)
}
 0x20f   :  { %s494_s12 = scalar_lea.hbm %s618_s5, 256 }
 0x210   :  { %p495_p1 = scmp.ne.s32.totalorder %s618_s5, %s494_s12  ;;  %p498_p2 = scmp.lt.u32.totalorder %s494_s12, %s618_s5 }
 0x212   :  { %p500_p3 = pnand %p498_p2, %p495_p1 }
 0x214   :  { %503 = shalt.err (!%p500_p3)
}
 0x215   :  { %289 = dma.vmem_to_hbm [thread:$0]  %s287_s9, 256, %s618_s5, [#allocation4]  }
 0x216   :  { %508 = dma.done.wait [#allocation4], 256  }
 0x217   :  { %509 = vsyncadd [#allocation4], 4294967040 }
 0x218   :  { %293 = vsyncpa [#allocation3], 1 }
 0x219   :  { %294 = vsyncpa [#allocation6], 1 }
 0x21a   :  { %295 = vsyncpa [#allocation4], 1 }

</bundles_post_ra>
